<compile_context>
chip_gen: v5e
topology: v5e:2x2
jax: 0.10.0
libtpu: 0.0.40
codegen_flags: <defaults>
</compile_context>

<pallas_src>
import functools

import jax
import jax.numpy as jnp
from jax.experimental import pallas as pl
from jax.experimental.pallas import tpu as pltpu

LANE = 128
SUBLANE_BF16 = 16


def _round_up(x, m):
    return (x + m - 1) // m * m


def mlp_kernel(x_ref, w1_ref, t1_ref, w2_ref, t2_ref, w3_ref, b3_ref, o_ref,
               *, out_dim):
    # Layer 1: bf16 MXU matmul, f32 accumulate; folded BN shift + ReLU in f32.
    x = x_ref[...]                                                    # [TB, Dp] bf16
    h = jnp.dot(x, w1_ref[...], preferred_element_type=jnp.float32)  # [TB, Hp] f32
    h = jnp.maximum(h + t1_ref[...], 0.0)
    # Dropout (eval) = identity.

    # Layer 2.
    h = jnp.dot(h.astype(jnp.bfloat16), w2_ref[...],
                preferred_element_type=jnp.float32)
    h = jnp.maximum(h + t2_ref[...], 0.0)

    if out_dim == 1:
        # Regression head (single output column): VPU multiply + XLU
        # lane-reduce, stored narrow as (TB, 1) f32 so the HBM writeback is
        # one column instead of a 128-lane-padded tile.
        w3_row = w3_ref[...]                                          # [1, Hp] f32
        o_ref[...] = (jnp.sum(h * w3_row, axis=-1, keepdims=True)
                      + b3_ref[...])
    else:
        # Classification head: lane-padded MXU matmul; wrapper slices
        # the valid columns (and applies softmax).
        o_ref[...] = jnp.dot(h.astype(jnp.bfloat16), w3_ref[...],
                             preferred_element_type=jnp.float32) + b3_ref[...]


def _choose_batch_tile(B, block_b):
    """Batch tile: multiple of 16 sublanes (bf16 packing)."""
    Bp16 = _round_up(B, SUBLANE_BF16)
    if Bp16 > block_b:
        return block_b                        # large batch: big pipelined tiles
    if Bp16 >= 512:
        # Medium batch: split into >= 2 grid steps so the "parallel" batch
        # axis can be sharded across both TensorCores on v7x.
        return _round_up((Bp16 + 1) // 2, SUBLANE_BF16)
    return Bp16                               # tiny batch: single step


def mlp_forward(x, params, *, block_b=2048, task="regression"):
    """x: [B, input_dim] float32. params: unfolded PyTorch-style parameters."""
    B, D = x.shape
    H = params["w1"].shape[1]
    out_dim = params["w3"].shape[1]

    Dp = _round_up(D, LANE)
    Hp = _round_up(H, LANE)

    # Fold eval-mode BatchNorm into the preceding Linear:
    #   (x@W + b) * s + t  ==  x @ (W*s) + (b*s + t)
    w1f = params["w1"] * params["s1"]
    t1f = params["b1"] * params["s1"] + params["t1"]
    w2f = params["w2"] * params["s2"]
    t2f = params["b2"] * params["s2"] + params["t2"]

    def pad2(a, r, c):
        return jnp.pad(a, ((0, r - a.shape[0]), (0, c - a.shape[1])))

    # Zero padding keeps the math exact (padded rows/cols contribute 0).
    w1p = pad2(w1f, Dp, Hp).astype(jnp.bfloat16)
    w2p = pad2(w2f, Hp, Hp).astype(jnp.bfloat16)
    t1p = pad2(t1f, 1, Hp)                    # shifts stay f32 (f32 epilogue)
    t2p = pad2(t2f, 1, Hp)

    if out_dim == 1:
        # Narrow regression head: W3 column as a lane-dense f32 row + f32 bias.
        w3p = pad2(params["w3"].T, 1, Hp)     # [1, Hp] f32
        b3p = params["b3"]                    # [1, 1]  f32
        Oo = 1
        w3_spec_shape = (1, Hp)
        b3_spec_shape = (1, 1)
    else:
        Oo = _round_up(out_dim, LANE)
        w3p = pad2(params["w3"], Hp, Oo).astype(jnp.bfloat16)
        b3p = pad2(params["b3"], 1, Oo)
        w3_spec_shape = (Hp, Oo)
        b3_spec_shape = (1, Oo)

    block_b = _round_up(block_b, SUBLANE_BF16)
    tb = _choose_batch_tile(B, block_b)
    Bp = _round_up(B, tb)
    xp = pad2(x, Bp, Dp).astype(jnp.bfloat16)

    grid = (Bp // tb,)

    def resident(shape):
        # Same block every grid step -> stays VMEM-resident across the grid.
        return pl.BlockSpec(shape, lambda i: (0, 0))

    out = pl.pallas_call(
        functools.partial(mlp_kernel, out_dim=out_dim),
        out_shape=jax.ShapeDtypeStruct((Bp, Oo), jnp.float32),
        grid=grid,
        in_specs=[
            pl.BlockSpec((tb, Dp), lambda i: (i, 0)),   # x batch tile (bf16)
            resident((Dp, Hp)),                         # W1' (bf16)
            resident((1, Hp)),                          # t1' (f32)
            resident((Hp, Hp)),                         # W2' (bf16)
            resident((1, Hp)),                          # t2' (f32)
            resident(w3_spec_shape),                    # W3 head
            resident(b3_spec_shape),                    # b3
        ],
        out_specs=pl.BlockSpec((tb, Oo), lambda i: (i, 0)),
        compiler_params=pltpu.CompilerParams(
            dimension_semantics=("parallel",),
            vmem_limit_bytes=32 * 1024 * 1024),
    )(xp, w1p, t1p, w2p, t2p, w3p, b3p)

    out = out[:B, :out_dim]
    if task == "classification":
        out = jax.nn.softmax(out, axis=-1)
    return out


def init_params(key, input_dim, hidden_dim, out_dim, eps=1e-5):
    ks = jax.random.split(key, 12)

    def lin(kw, kb, fan_in, fan_out):
        # PyTorch Linear stores weight as [out, in]; we use [in, out].
        w = jax.random.normal(kw, (fan_in, fan_out), jnp.float32) * 0.1
        b = jax.random.normal(kb, (1, fan_out), jnp.float32) * 0.05
        return w, b

    def bn(kg, kb, km, kv, dim):
        gamma = 1.0 + 0.1 * jax.random.normal(kg, (1, dim), jnp.float32)
        beta = 0.05 * jax.random.normal(kb, (1, dim), jnp.float32)
        r_mean = 0.1 * jax.random.normal(km, (1, dim), jnp.float32)
        r_var = 1.0 + 0.1 * jax.random.uniform(kv, (1, dim), jnp.float32)
        # Eval-mode BN as an affine scale/shift.
        s = gamma / jnp.sqrt(r_var + eps)
        t = beta - r_mean * s
        return s, t

    w1, b1 = lin(ks[0], ks[1], input_dim, hidden_dim)
    s1, t1 = bn(ks[2], ks[3], ks[4], ks[5], hidden_dim)
    w2, b2 = lin(ks[6], ks[7], hidden_dim, hidden_dim)
    s2, t2 = bn(ks[8], ks[9], ks[10], ks[11], hidden_dim)
    kw3, kb3 = jax.random.split(jax.random.fold_in(key, 99))
    w3, b3 = lin(kw3, kb3, hidden_dim, out_dim)

    return dict(w1=w1, b1=b1, s1=s1, t1=t1,
                w2=w2, b2=b2, s2=s2, t2=t2,
                w3=w3, b3=b3)


def mlp_reference(x, p):
    h = x @ p["w1"] + p["b1"]
    h = jnp.maximum(h * p["s1"] + p["t1"], 0.0)
    h = h @ p["w2"] + p["b2"]
    h = jnp.maximum(h * p["s2"] + p["t2"], 0.0)
    return h @ p["w3"] + p["b3"]


if __name__ == "__main__":
    key = jax.random.PRNGKey(0)

    # Small toy case (module defaults: regression => out_dim=1).
    B, INPUT_DIM, HIDDEN_DIM, OUT_DIM = 8, 32, 32, 1
    kx, kp, k2 = jax.random.split(key, 3)
    x = jax.random.normal(kx, (B, INPUT_DIM), jnp.float32)
    params = init_params(kp, INPUT_DIM, HIDDEN_DIM, OUT_DIM)

    out = jax.block_until_ready(mlp_forward(x, params))
    ref = mlp_reference(x, params)
    assert out.shape == (B, OUT_DIM), out.shape
    assert jnp.allclose(out, ref, atol=5e-2, rtol=5e-2), (
        "mismatch vs reference (small case)")

    # Larger case exercising the multi-step pipelined batch grid + padding.
    B2 = 300
    x2 = jax.random.normal(k2, (B2, INPUT_DIM), jnp.float32)
    out2 = jax.block_until_ready(mlp_forward(x2, params, block_b=128))
    ref2 = mlp_reference(x2, params)
    assert out2.shape == (B2, OUT_DIM), out2.shape
    assert jnp.allclose(out2, ref2, atol=5e-2, rtol=5e-2), (
        "mismatch vs reference (gridded case)")

    print("KERNEL_OK")
</pallas_src>

<mosaic_0001>
module attributes {stable_mosaic.version = 11 : i64} {
  func.func @mlp_kernel(%arg0: i32, %arg1: memref<16x128xbf16, #tpu.memory_space<vmem>>, %arg2: memref<128x128xbf16, #tpu.memory_space<vmem>>, %arg3: memref<1x128xf32, #tpu.memory_space<vmem>>, %arg4: memref<128x128xbf16, #tpu.memory_space<vmem>>, %arg5: memref<1x128xf32, #tpu.memory_space<vmem>>, %arg6: memref<1x128xf32, #tpu.memory_space<vmem>>, %arg7: memref<1x1xf32, #tpu.memory_space<vmem>>, %arg8: memref<16x1xf32, #tpu.memory_space<vmem>>) attributes {dimension_semantics = [#tpu.dimension_semantics<parallel>], iteration_bounds = array<i64: 1>, scalar_prefetch = 0 : i64, scratch_operands = 0 : i64, tpu.core_type = #tpu.core_type<tc>, window_params = [{transform_indices = @transform_0, window_bounds = array<i64: 16, 128>}, {pipeline_mode = #tpu.pipeline_mode<synchronous>, transform_indices = @transform_1, window_bounds = array<i64: 128, 128>}, {pipeline_mode = #tpu.pipeline_mode<synchronous>, transform_indices = @transform_2, window_bounds = array<i64: 1, 128>}, {pipeline_mode = #tpu.pipeline_mode<synchronous>, transform_indices = @transform_3, window_bounds = array<i64: 128, 128>}, {pipeline_mode = #tpu.pipeline_mode<synchronous>, transform_indices = @transform_4, window_bounds = array<i64: 1, 128>}, {pipeline_mode = #tpu.pipeline_mode<synchronous>, transform_indices = @transform_5, window_bounds = array<i64: 1, 128>}, {pipeline_mode = #tpu.pipeline_mode<synchronous>, transform_indices = @transform_6, window_bounds = array<i64: 1, 1>}, {transform_indices = @transform_7, window_bounds = array<i64: 16, 1>}]} {
    %c0 = arith.constant 0 : index
    %c0_0 = arith.constant 0 : index
    %0 = vector.load %arg1[%c0, %c0_0] : memref<16x128xbf16, #tpu.memory_space<vmem>>, vector<16x128xbf16>
    %c0_1 = arith.constant 0 : index
    %c0_2 = arith.constant 0 : index
    %1 = vector.load %arg2[%c0_1, %c0_2] : memref<128x128xbf16, #tpu.memory_space<vmem>>, vector<128x128xbf16>
    %cst = arith.constant dense<0.000000e+00> : vector<16x128xf32>
    %2 = tpu.matmul %0, %1, %cst {dimension_numbers = #tpu.dot_dimension_numbers<[1], [0], [0], [1], [0, 0, 1, 1], [], []>} : vector<16x128xbf16>, vector<128x128xbf16>, vector<16x128xf32> -> vector<16x128xf32>
    %c0_3 = arith.constant 0 : index
    %c0_4 = arith.constant 0 : index
    %3 = vector.load %arg3[%c0_3, %c0_4] : memref<1x128xf32, #tpu.memory_space<vmem>>, vector<1x128xf32>
    %4 = vector.broadcast %3 : vector<1x128xf32> to vector<16x128xf32>
    %5 = arith.addf %2, %4 : vector<16x128xf32>
    %cst_5 = arith.constant 0.000000e+00 : f32
    %6 = vector.broadcast %cst_5 : f32 to vector<16x128xf32>
    %7 = arith.maximumf %5, %6 : vector<16x128xf32>
    %8 = arith.truncf %7 : vector<16x128xf32> to vector<16x128xbf16>
    %c0_6 = arith.constant 0 : index
    %c0_7 = arith.constant 0 : index
    %9 = vector.load %arg4[%c0_6, %c0_7] : memref<128x128xbf16, #tpu.memory_space<vmem>>, vector<128x128xbf16>
    %cst_8 = arith.constant dense<0.000000e+00> : vector<16x128xf32>
    %10 = tpu.matmul %8, %9, %cst_8 {dimension_numbers = #tpu.dot_dimension_numbers<[1], [0], [0], [1], [0, 0, 1, 1], [], []>} : vector<16x128xbf16>, vector<128x128xbf16>, vector<16x128xf32> -> vector<16x128xf32>
    %c0_9 = arith.constant 0 : index
    %c0_10 = arith.constant 0 : index
    %11 = vector.load %arg5[%c0_9, %c0_10] : memref<1x128xf32, #tpu.memory_space<vmem>>, vector<1x128xf32>
    %12 = vector.broadcast %11 : vector<1x128xf32> to vector<16x128xf32>
    %13 = arith.addf %10, %12 : vector<16x128xf32>
    %cst_11 = arith.constant 0.000000e+00 : f32
    %14 = vector.broadcast %cst_11 : f32 to vector<16x128xf32>
    %15 = arith.maximumf %13, %14 : vector<16x128xf32>
    %c0_12 = arith.constant 0 : index
    %c0_13 = arith.constant 0 : index
    %16 = vector.load %arg6[%c0_12, %c0_13] : memref<1x128xf32, #tpu.memory_space<vmem>>, vector<1x128xf32>
    %17 = vector.broadcast %16 : vector<1x128xf32> to vector<16x128xf32>
    %18 = arith.mulf %15, %17 : vector<16x128xf32>
    %cst_14 = arith.constant dense<0.000000e+00> : vector<16xf32>
    %19 = vector.multi_reduction <add>, %18, %cst_14 [1] : vector<16x128xf32> to vector<16xf32>
    %20 = vector.shape_cast %19 : vector<16xf32> to vector<16x1xf32>
    %c0_15 = arith.constant 0 : index
    %c0_16 = arith.constant 0 : index
    %21 = vector.load %arg7[%c0_15, %c0_16] : memref<1x1xf32, #tpu.memory_space<vmem>>, vector<1x1xf32>
    %22 = vector.broadcast %21 : vector<1x1xf32> to vector<16x1xf32>
    %23 = arith.addf %20, %22 : vector<16x1xf32>
    %c0_17 = arith.constant 0 : index
    %c0_18 = arith.constant 0 : index
    %24 = vector.load %arg8[%c0_17, %c0_18] : memref<16x1xf32, #tpu.memory_space<vmem>>, vector<16x1xf32>
    tpu.vector_store %arg8[%c0_17, %c0_18], %23 {strides = array<i32>} : memref<16x1xf32, #tpu.memory_space<vmem>>, vector<16x1xf32>,
    return
  }
  func.func @transform_0(%arg0: i32) -> (i32, i32) {
    %c0_i32 = arith.constant 0 : i32
    %c0_i32_0 = arith.constant 0 : i32
    return %arg0, %c0_i32 : i32, i32
  }
  func.func @transform_1(%arg0: i32) -> (i32, i32) {
    %c0_i32 = arith.constant 0 : i32
    %c0_i32_0 = arith.constant 0 : i32
    %c0_i32_1 = arith.constant 0 : i32
    return %c0_i32, %c0_i32_0 : i32, i32
  }
  func.func @transform_2(%arg0: i32) -> (i32, i32) {
    %c0_i32 = arith.constant 0 : i32
    %c0_i32_0 = arith.constant 0 : i32
    %c0_i32_1 = arith.constant 0 : i32
    return %c0_i32, %c0_i32_0 : i32, i32
  }
  func.func @transform_3(%arg0: i32) -> (i32, i32) {
    %c0_i32 = arith.constant 0 : i32
    %c0_i32_0 = arith.constant 0 : i32
    %c0_i32_1 = arith.constant 0 : i32
    return %c0_i32, %c0_i32_0 : i32, i32
  }
  func.func @transform_4(%arg0: i32) -> (i32, i32) {
    %c0_i32 = arith.constant 0 : i32
    %c0_i32_0 = arith.constant 0 : i32
    %c0_i32_1 = arith.constant 0 : i32
    return %c0_i32, %c0_i32_0 : i32, i32
  }
  func.func @transform_5(%arg0: i32) -> (i32, i32) {
    %c0_i32 = arith.constant 0 : i32
    %c0_i32_0 = arith.constant 0 : i32
    %c0_i32_1 = arith.constant 0 : i32
    return %c0_i32, %c0_i32_0 : i32, i32
  }
  func.func @transform_6(%arg0: i32) -> (i32, i32) {
    %c0_i32 = arith.constant 0 : i32
    %c0_i32_0 = arith.constant 0 : i32
    %c0_i32_1 = arith.constant 0 : i32
    return %c0_i32, %c0_i32_0 : i32, i32
  }
  func.func @transform_7(%arg0: i32) -> (i32, i32) {
    %c0_i32 = arith.constant 0 : i32
    %c0_i32_0 = arith.constant 0 : i32
    return %arg0, %c0_i32 : i32, i32
  }
}

</mosaic_0001>

<bundles_post_ra>
// kernel: tpu_custom_call.1
= control target key start
LH: loop header
LB: loop body
LE: loop exit
PB: predicated region body
PF: predicated region fallthrough
CT: control target
= control target key end

     0   :  { %s519_s0 = inlined_call_operand.hbm [shape: bf16[16,128], index: 0, kind: input, shape index: {}]   ;;  %s520_s1 = inlined_call_operand.hbm [shape: bf16[128,128], index: 1, kind: input, shape index: {}]   ;;  %s521_s2 = inlined_call_operand.vmem [shape: f32[1,128], index: 2, kind: input, shape index: {}]   ;;  %s522_s3 = inlined_call_operand.hbm [shape: bf16[128,128], index: 3, kind: input, shape index: {}]   ;;  %s523_s4 = inlined_call_operand.vmem [shape: f32[1,128], index: 4, kind: input, shape index: {}]   ;;  %s524_s5 = inlined_call_operand.vmem [shape: f32[1,128], index: 5, kind: input, shape index: {}]   ;;  %s525_s6 = inlined_call_operand.<no memory space> [shape: f32[1,1], index: 6, kind: input, shape index: {}]   ;;  %s526_s7 = inlined_call_operand.vmem [shape: f32[16,1], index: 7, kind: output, shape index: {}]  }
   0x1   :  { %v12_v0 = vstv %s525_s6 }
   0x2   :  { %13 = vst [vmem:[#allocation2] sm:$0x1] %v12_v0 }
   0x3   :  { %14 = vsyncpa [#allocation4], 0 }
   0x4   :  { %15 = vsyncpa [#allocation6], 0  ;;  %s33_s28 = sshll.u32 %s520_s1, 4  ;;  %s447_s29 = smov [#allocation5]   ;;  %s34_s28 = int_to_ptr.hbm [resolvable:$true] %s33_s28 }
   0x5   :  { %s35_s30 = sshll.u32 %s447_s29, 4  ;;  %s20_s10 = sshll.u32 %s519_s0, 4  ;;  %s36_s30 = int_to_ptr.vmem [resolvable:$true] %s35_s30  ;;  %s21_s10 = int_to_ptr.hbm [resolvable:$true] %s20_s10 }
   0x6   :  { %s448_s11 = smov 64   ;;  %s449_s12 = smov 4  }
   0x7   :  { %41 = dma.hbm_to_vmem [thread:$0]  %s34_s28, 1024, %s36_s30, [#allocation6], %s448_s11, %s448_s11, %s449_s12  }
   0x8   :  { %s450_s6 = smov [#allocation3]   ;;  %s48_s16 = sshll.u32 %s522_s3, 4  ;;  %s49_s16 = int_to_ptr.hbm [resolvable:$true] %s48_s16 }
   0x9   :  { %s22_s13 = sshll.u32 %s450_s6, 4  ;;  %s451_s1 = smov [#allocation7]   ;;  %s23_s13 = int_to_ptr.vmem [resolvable:$true] %s22_s13 }
   0xa   :  { %28 = dma.hbm_to_vmem [thread:$0]  %s21_s10, 128, %s23_s13, [#allocation4], %s448_s11, %s448_s11, %s449_s12  }
   0xb   :  { %s50_s17 = sshll.u32 %s451_s1, 4  ;;  %s51_s17 = int_to_ptr.vmem [resolvable:$true] %s50_s17 }
   0xc   :  { %56 = dma.hbm_to_vmem [thread:$0]  %s49_s16, 1024, %s51_s17, [#allocation6], %s448_s11, %s448_s11, %s449_s12  }
   0xd   :  { %443 = dma.done.wait [#allocation4], 128  }
   0xe   :  { %444 = vsyncadd [#allocation4], 4294967168 }
   0xf   :  { %445 = dma.done.wait [#allocation6], 2048  }
  0x10   :  { %446 = vsyncadd [#allocation6], 4294965248  ;;  %v353_v1 = vld [vmem:[#allocation5 + $0x38] sm:$0xff]  ;;  %v352_v2 = vld [vmem:[#allocation5 + $0x30] sm:$0xff]  ;;  %vm268_vm0 = vcmask 7168  }
  0x11   :  { %151 = vmatpush.bf16.msra.mxu0 %v353_v1  ;;  %v361_v3 = vld [vmem:[#allocation7 + $0x38] sm:$0xff]  ;;  %v360_v4 = vld [vmem:[#allocation7 + $0x30] sm:$0xff]  ;;  %v351_v5 = vld [vmem:[#allocation5 + $0x28] sm:$0xff] }
  0x12   :  { %236 = vmatpush.bf16.msra.mxu1 %v361_v3  ;;  %v359_v6 = vld [vmem:[#allocation7 + $0x28] sm:$0xff]  ;;  %v350_v7 = vld [vmem:[#allocation5 + $0x20] sm:$0xff]  ;;  %v349_v9 = vld [vmem:[#allocation5 + $0x18] sm:$0xff] }
  0x13   :  { %v358_v8 = vld [vmem:[#allocation7 + $0x20] sm:$0xff]  ;;  %v348_v10 = vld [vmem:[#allocation5 + $0x10] sm:$0xff]  ;;  %v347_v11 = vld [vmem:[#allocation5 + $0x8] sm:$0xff] }
  0x14   :  { %v346_v12 = vld [vmem:[#allocation5] sm:$0xff]  ;;  %v345_v13 = vld [vmem:[#allocation3] sm:$0xff]  ;;  %v356_v15 = vld [vmem:[#allocation7 + $0x10] sm:$0xff] }
  0x15   :  { %152 = vmatpush.bf16.msra.mxu0 %v352_v2  ;;  %v357_v14 = vld [vmem:[#allocation7 + $0x18] sm:$0xff]  ;;  %v355_v16 = vld [vmem:[#allocation7 + $0x8] sm:$0xff]  ;;  %v354_v17 = vld [vmem:[#allocation7] sm:$0xff] }
  0x16   :  { %237 = vmatpush.bf16.msra.mxu1 %v360_v4  ;;  %v367_v19 = vld [vmem:[%s521_s2] ss:$0 sm:$0xff] }
  0x17   :  { %v368_v26 = vld [vmem:[%s523_s4] ss:$0 sm:$0xff] }
  0x18   :  { %v369_v29 = vld [vmem:[%s524_s5] ss:$0 sm:$0xff] }
  0x19   :  { %153 = vmatpush.bf16.msra.mxu0 %v351_v5  ;;  %v370_v36 = vld [vmem:[#allocation2] ss:$0 sm:$0xff] }
  0x1a   :  { %238 = vmatpush.bf16.msra.mxu1 %v359_v6 }
  0x1d   :  { %154 = vmatpush.bf16.msra.mxu0 %v350_v7 }
  0x1e   :  { %239 = vmatpush.bf16.msra.mxu1 %v358_v8 }
  0x21   :  { %155 = vmatpush.bf16.msra.mxu0 %v349_v9 }
  0x22   :  { %240 = vmatpush.bf16.msra.mxu1 %v357_v14 }
  0x25   :  { %156 = vmatpush.bf16.msra.mxu0 %v348_v10 }
  0x26   :  { %241 = vmatpush.bf16.msra.mxu1 %v356_v15 }
  0x29   :  { %157 = vmatpush.bf16.msra.mxu0 %v347_v11 }
  0x2a   :  { %242 = vmatpush.bf16.msra.mxu1 %v355_v16 }
  0x2d   :  { %158 = vmatpush.bf16.msra.mxu0 %v346_v12 }
  0x2e   :  { %243 = vmatpush.bf16.msra.mxu1 %v354_v17 }
  0x30   :  { %159 = vmatmul.bf16.vlgmr.msra.gmra.mxu0 %v345_v13 }
  0xad   :  { %v160_v18 = vpop.f32.mrf.mxu0 }
  0xae   :  { %v161_v20 = vadd.f32 %v367_v19, %v160_v18 }
  0xb0   :  { %v165_v23 = vmax.f32 %v161_v20, 0.0 }
  0xb5   :  { %v162_v21 = vpop.f32.mrf.mxu0 }
  0xb6   :  { %v163_v22 = vadd.f32 %v367_v19, %v162_v21 }
  0xb8   :  { %v166_v24 = vmax.f32 %v163_v22, 0.0 }
  0xba   :  { %v167_v25 = vpack.c.bf16 %v166_v24, %v165_v23 }
  0xbc   :  { %244 = vmatmul.bf16.vlgmr.msra.gmra.mxu1 %v167_v25 }
 0x139   :  { %v245_v27 = vpop.f32.mrf.mxu1 }
 0x13a   :  { %v246_v28 = vadd.f32 %v368_v26, %v245_v27 }
 0x13c   :  { %v250_v30 = vmax.f32 %v246_v28, 0.0 }
 0x13e   :  { %v256_v31 = vmul.f32 %v369_v29, %v250_v30 }
 0x140   :  { %258 = vadd.xlane.f32.xlu0 %v256_v31 }
 0x141   :  { %v247_v32 = vpop.f32.mrf.mxu1 }
 0x142   :  { %v248_v33 = vadd.f32 %v368_v26, %v247_v32 }
 0x144   :  { %v251_v34 = vmax.f32 %v248_v33, 0.0 }
 0x146   :  { %v257_v35 = vmul.f32 %v369_v29, %v251_v34 }
 0x148   :  { %260 = vadd.xlane.f32.xlu0 %v257_v35 }
 0x1b3   :  { %v259_v37 = vpop.xlane.xlu0 %258 }
 0x1b4   :  { %v266_v38 = vadd.f32 %v370_v36, %v259_v37 }
 0x1b6   :  { %269 = vst.msk [vmem:[%s526_s7] sm:$0xff] %vm268_vm0, %v266_v38 }
 0x1bb   :  { %v261_v39 = vpop.xlane.xlu0 %260 }
 0x1bc   :  { %v267_v40 = vadd.f32 %v370_v36, %v261_v39 }
 0x1be   :  { %270 = vst.msk [vmem:[%s526_s7 + $0x8] sm:$0xff] %vm268_vm0, %v267_v40 }
 0x1bf   :  { %275 = vsyncpa [#allocation4], 1 }
 0x1c0   :  { %276 = vsyncpa [#allocation6], 1 }

</bundles_post_ra>
